<compile_context>
chip_gen: v7x
topology: tpu7x:2x2x1
jax: 0.10.0
libtpu: 0.0.40
codegen_flags: <defaults>
</compile_context>

<pallas_src>
import jax
import jax.numpy as jnp
from jax.experimental import pallas as pl
from jax.experimental.pallas import tpu as pltpu

# ---------------- model hyper-parameters (small, self-consistent) ----------
B = 2            # batch
S = 8            # sequence length
H = 32           # hidden_size
NUM_CAT1 = 6     # cat1 labels
NUM_CAT2 = 18    # cat2 labels
NUM_CAT3 = 30    # args.num_labels
H2 = H + NUM_CAT1               # cat2 head hidden size  (H + 6  = 38)
H3 = H + NUM_CAT1 + NUM_CAT2    # cat3 head hidden size  (H + 24 = 56)

LANE = 128

# lane offsets of the three hidden pre-activations inside a 128-lane register
L1, L2, L3 = 0, H, H + H2                      # 0, 32, 70   (L3 + H3 = 126)
# lane offsets of the three logit blocks inside the packed output
O1, O2, O3 = 0, NUM_CAT1, NUM_CAT1 + NUM_CAT2  # 0, 6, 24    (O3 + 30 = 54)

# row offsets of the blocks inside the packed weight slab (all 8-row aligned)
R_WCLS = 0      # [H,   128]  fused CLS projection for all 3 dense layers
R_W1C = 32      # [H,   128]  combined W1: cols 0:6 -> cat1 (pre-bias),
                #             cols 32:70 / 70:126 -> cat1 contribution to h2/h3
R_W2C = 64      # [128, 128]  combined W2 (rows 32:70): cols 6:24 -> cat2
                #             (pre-bias), cols 70:126 -> cat2 contribution to h3
R_W3O = 192     # [128, 128]  head-3 out_proj (rows 70:126 -> cols 24:54)
R_BD = 320      # row: dense biases + folded out-bias feed-forward constants
R_BO = 328      # row: merged out_proj biases (lanes 0:6 | 6:24 | 24:54)
R_TOTAL = 336   # 336 x 128 f32 = 168 KiB (84 KiB bf16)


# ---------------------------- Pallas kernel --------------------------------
def _nlp_cat_kernel(cls_ref, w_ref, out_ref):
    # Weights are upcast at load; activations / accumulation stay f32.
    def load(r0, nrows):
        return w_ref[r0:r0 + nrows, :].astype(jnp.float32)

    cls = cls_ref[...]                                   # [B, H] f32

    w_cls = load(R_WCLS, H)                              # [H,   128]
    w1c = load(R_W1C, H)                                 # [H,   128]
    w2c = load(R_W2C, LANE)                              # [128, 128]
    w3o = load(R_W3O, LANE)                              # [128, 128]
    b_d = load(R_BD, 1)                                  # [1, 128]
    b_o = load(R_BO, 1)                                  # [1, 128]

    def dot(a, b):
        return jnp.dot(a, b, preferred_element_type=jnp.float32)

    # --- serial MXU chain: 4 dependent matmuls -----------------------------
    # All CLS-dependent dense pre-activations (plus folded bias constants).
    z = dot(cls, w_cls) + b_d                            # [B, 128]

    # cat1 head: only h1 lanes 0:32 are needed by the combined W1.
    h1 = jnp.tanh(z[:, :H])                              # [B, 32]
    y1 = dot(h1, w1c)            # lanes 0:6 = cat1-b1o ; 32:126 = cat1->h2,h3

    # cat2 head: CLS part already in z, cat1 part in y1.
    p2 = z + y1
    h2 = jnp.tanh(p2)            # lanes 32:70 valid (junk masked by zero rows)
    y2 = dot(h2, w2c)            # lanes 6:24 = cat2-b2o ; 70:126 = cat2->h3

    # cat3 head: CLS / cat1 / cat2 parts already in p2 + y2.
    h3 = jnp.tanh(p2 + y2)       # lanes 70:126 valid
    y3 = dot(h3, w3o)            # lanes 24:54 = cat3-b3o, rest exactly 0

    # Keep the cat1/cat2 logit lanes of y1+y2, drop the hidden-contribution
    # lanes (>= 32), add cat3 and the merged out-proj bias row.
    lane = jax.lax.broadcasted_iota(jnp.int32, (B, LANE), 1)
    logits12 = jnp.where(lane < O3, y1 + y2, 0.0)
    out_ref[...] = (logits12 + y3 + b_o).astype(out_ref.dtype)


def nlp_cat_model(last_hidden_state, packed_w):
    """last_hidden_state: [B, S, H] f32; packed_w: [R_TOTAL, 128] f32/bf16 slab."""
    # CLS-only input DMA: slice at HBM in the wrapper (S-fold less HBM->VMEM
    # traffic than shipping the whole [B,S,H] block into the kernel).
    cls = last_hidden_state[:, 0, :]                     # [B, H]
    vmem = pl.BlockSpec(memory_space=pltpu.MemorySpace.VMEM)
    packed_out = pl.pallas_call(
        _nlp_cat_kernel,
        out_shape=jax.ShapeDtypeStruct((B, LANE), jnp.float32),
        in_specs=[vmem, vmem],
        out_specs=vmem,
    )(cls, packed_w)
    cat1 = packed_out[:, O1:O1 + NUM_CAT1]
    cat2 = packed_out[:, O2:O2 + NUM_CAT2]
    cat3 = packed_out[:, O3:O3 + NUM_CAT3]
    return cat1, cat2, cat3


# --------------------- static weight packing (done once) -------------------
def pack_params(p, dtype=jnp.float32):
    """Pack + offline-compose all weights/biases into one 128-lane slab."""
    slab = jnp.zeros((R_TOTAL, LANE), jnp.float32)

    w1d, b1d = p["w1_dense"], p["b1_dense"]              # [32,32], [1,32]
    w1o, b1o = p["w1_out"], p["b1_out"]                  # [32, 6], [1, 6]
    w2d, b2d = p["w2_dense"], p["b2_dense"]              # [38,38], [1,38]
    w2o, b2o = p["w2_out"], p["b2_out"]                  # [38,18], [1,18]
    w3d, b3d = p["w3_dense"], p["b3_dense"]              # [56,56], [1,56]
    w3o, b3o = p["w3_out"], p["b3_out"]                  # [56,30], [1,30]

    # dense matrices split by input block of the concatenated features
    w2d_c1, w2d_cls = w2d[:NUM_CAT1, :], w2d[NUM_CAT1:, :]
    w3d_c1 = w3d[:NUM_CAT1, :]
    w3d_c2 = w3d[NUM_CAT1:NUM_CAT1 + NUM_CAT2, :]
    w3d_cls = w3d[NUM_CAT1 + NUM_CAT2:, :]

    # Fused CLS projection: CLS-dependent rows of all three dense layers.
    slab = slab.at[R_WCLS:R_WCLS + H, L1:L1 + H].set(w1d)
    slab = slab.at[R_WCLS:R_WCLS + H, L2:L2 + H2].set(w2d_cls)
    slab = slab.at[R_WCLS:R_WCLS + H, L3:L3 + H3].set(w3d_cls)

    # Combined W1 (contracts over h1 lanes only -> stored as [32,128]):
    # out_proj plus the offline-composed cat1 -> {h2, h3} dense contributions.
    slab = slab.at[R_W1C:R_W1C + H, O1:O1 + NUM_CAT1].set(w1o)
    slab = slab.at[R_W1C:R_W1C + H, L2:L2 + H2].set(w1o @ w2d_c1)
    slab = slab.at[R_W1C:R_W1C + H, L3:L3 + H3].set(w1o @ w3d_c1)

    # Combined W2 (rows = h2 lanes): out_proj plus composed cat2 -> h3.
    slab = slab.at[R_W2C + L2:R_W2C + L2 + H2, O2:O2 + NUM_CAT2].set(w2o)
    slab = slab.at[R_W2C + L2:R_W2C + L2 + H2, L3:L3 + H3].set(w2o @ w3d_c2)

    # Head-3 out_proj (rows = h3 lanes, cols = cat3 lanes).
    slab = slab.at[R_W3O + L3:R_W3O + L3 + H3, O3:O3 + NUM_CAT3].set(w3o)

    # Dense biases + folded constant rows b1_out@W2d_c1 / b1_out@W3d_c1 /
    # b2_out@W3d_c2 (all on one slab row, disjoint lane ranges).
    slab = slab.at[R_BD, L1:L1 + H].set(b1d[0])
    slab = slab.at[R_BD, L2:L2 + H2].set(b2d[0] + (b1o @ w2d_c1)[0])
    slab = slab.at[R_BD, L3:L3 + H3].set(
        b3d[0] + (b1o @ w3d_c1)[0] + (b2o @ w3d_c2)[0])

    # Merged out_proj biases (disjoint logit lane ranges -> one row).
    slab = slab.at[R_BO, O1:O1 + NUM_CAT1].set(b1o[0])
    slab = slab.at[R_BO, O2:O2 + NUM_CAT2].set(b2o[0])
    slab = slab.at[R_BO, O3:O3 + NUM_CAT3].set(b3o[0])

    return slab.astype(dtype)


# ------------------------- deterministic parameter init --------------------
def init_params(key):
    def lin(key, fan_in, fan_out):
        kw, kb = jax.random.split(key)
        scale = 1.0 / jnp.sqrt(fan_in)
        w = jax.random.uniform(kw, (fan_in, fan_out), jnp.float32, -scale, scale)
        b = jax.random.uniform(kb, (1, fan_out), jnp.float32, -scale, scale)
        return w, b

    keys = jax.random.split(key, 6)
    p = {}
    p["w1_dense"], p["b1_dense"] = lin(keys[0], H, H)
    p["w1_out"], p["b1_out"] = lin(keys[1], H, NUM_CAT1)
    p["w2_dense"], p["b2_dense"] = lin(keys[2], H2, H2)
    p["w2_out"], p["b2_out"] = lin(keys[3], H2, NUM_CAT2)
    p["w3_dense"], p["b3_dense"] = lin(keys[4], H3, H3)
    p["w3_out"], p["b3_out"] = lin(keys[5], H3, NUM_CAT3)
    return p


# ------------------------------- reference ---------------------------------
def reference(last_hidden_state, p):
    cls = last_hidden_state[:, 0, :]
    h1 = jnp.tanh(cls @ p["w1_dense"] + p["b1_dense"])
    c1 = h1 @ p["w1_out"] + p["b1_out"]
    x2 = jnp.concatenate([c1, cls], axis=1)
    h2 = jnp.tanh(x2 @ p["w2_dense"] + p["b2_dense"])
    c2 = h2 @ p["w2_out"] + p["b2_out"]
    x3 = jnp.concatenate([c1, c2, cls], axis=1)
    h3 = jnp.tanh(x3 @ p["w3_dense"] + p["b3_dense"])
    c3 = h3 @ p["w3_out"] + p["b3_out"]
    return c1, c2, c3


if __name__ == "__main__":
    key = jax.random.PRNGKey(0)
    k_x, k_p = jax.random.split(key)

    last_hidden_state = jax.random.normal(k_x, (B, S, H), jnp.float32)
    params = init_params(k_p)
    r1, r2, r3 = reference(last_hidden_state, params)

    # f32 weight slab: tight reference check validates the lane packing.
    slab_f32 = pack_params(params, jnp.float32)
    cat1, cat2, cat3 = nlp_cat_model(last_hidden_state, slab_f32)
    jax.block_until_ready((cat1, cat2, cat3))
    assert cat1.shape == (B, NUM_CAT1)
    assert cat2.shape == (B, NUM_CAT2)
    assert cat3.shape == (B, NUM_CAT3)
    assert jnp.allclose(cat1, r1, atol=1e-5)
    assert jnp.allclose(cat2, r2, atol=1e-5)
    assert jnp.allclose(cat3, r3, atol=1e-5)

    # bf16 weight slab (v5e/v6e: halves the dominant weight DMA).  Expected
    # ~1e-3 error from bf16 weight quantization; activations stay f32.
    slab_bf16 = pack_params(params, jnp.bfloat16)
    q1, q2, q3 = nlp_cat_model(last_hidden_state, slab_bf16)
    jax.block_until_ready((q1, q2, q3))
    assert jnp.allclose(q1, r1, atol=5e-2)
    assert jnp.allclose(q2, r2, atol=5e-2)
    assert jnp.allclose(q3, r3, atol=5e-2)

    print("KERNEL_OK")
</pallas_src>

<mosaic_0001>
module attributes {stable_mosaic.version = 11 : i64} {
  func.func @_nlp_cat_kernel(%arg0: memref<2x32xf32, #tpu.memory_space<vmem>>, %arg1: memref<336x128xf32, #tpu.memory_space<vmem>>, %arg2: memref<2x128xf32, #tpu.memory_space<vmem>>) attributes {dimension_semantics = [], scalar_prefetch = 0 : i64, scratch_operands = 0 : i64, tpu.core_type = #tpu.core_type<tc>} {
    %c0 = arith.constant 0 : index
    %c0_0 = arith.constant 0 : index
    %0 = vector.load %arg0[%c0, %c0_0] : memref<2x32xf32, #tpu.memory_space<vmem>>, vector<2x32xf32>
    %c0_1 = arith.constant 0 : index
    %c0_2 = arith.constant 0 : index
    %1 = vector.load %arg1[%c0_1, %c0_2] : memref<336x128xf32, #tpu.memory_space<vmem>>, vector<32x128xf32>
    %c32 = arith.constant 32 : index
    %c0_3 = arith.constant 0 : index
    %2 = vector.load %arg1[%c32, %c0_3] : memref<336x128xf32, #tpu.memory_space<vmem>>, vector<32x128xf32>
    %c64 = arith.constant 64 : index
    %c0_4 = arith.constant 0 : index
    %3 = vector.load %arg1[%c64, %c0_4] : memref<336x128xf32, #tpu.memory_space<vmem>>, vector<128x128xf32>
    %c192 = arith.constant 192 : index
    %c0_5 = arith.constant 0 : index
    %4 = vector.load %arg1[%c192, %c0_5] : memref<336x128xf32, #tpu.memory_space<vmem>>, vector<128x128xf32>
    %c320 = arith.constant 320 : index
    %c0_6 = arith.constant 0 : index
    %5 = vector.load %arg1[%c320, %c0_6] : memref<336x128xf32, #tpu.memory_space<vmem>>, vector<1x128xf32>
    %c328 = arith.constant 328 : index
    %c0_7 = arith.constant 0 : index
    %6 = vector.load %arg1[%c328, %c0_7] : memref<336x128xf32, #tpu.memory_space<vmem>>, vector<1x128xf32>
    %cst = arith.constant dense<0.000000e+00> : vector<2x128xf32>
    %7 = tpu.matmul %0, %1, %cst {dimension_numbers = #tpu.dot_dimension_numbers<[1], [0], [0], [1], [0, 0, 1, 1], [], []>} : vector<2x32xf32>, vector<32x128xf32>, vector<2x128xf32> -> vector<2x128xf32>
    %8 = vector.broadcast %5 : vector<1x128xf32> to vector<2x128xf32>
    %9 = arith.addf %7, %8 : vector<2x128xf32>
    %10 = vector.extract_strided_slice %9 {offsets = [0, 0], sizes = [2, 32], strides = [1, 1]} : vector<2x128xf32> to vector<2x32xf32>
    %11 = math.tanh %10 : vector<2x32xf32>
    %cst_8 = arith.constant dense<0.000000e+00> : vector<2x128xf32>
    %12 = tpu.matmul %11, %2, %cst_8 {dimension_numbers = #tpu.dot_dimension_numbers<[1], [0], [0], [1], [0, 0, 1, 1], [], []>} : vector<2x32xf32>, vector<32x128xf32>, vector<2x128xf32> -> vector<2x128xf32>
    %13 = arith.addf %9, %12 : vector<2x128xf32>
    %14 = math.tanh %13 : vector<2x128xf32>
    %cst_9 = arith.constant dense<0.000000e+00> : vector<2x128xf32>
    %15 = tpu.matmul %14, %3, %cst_9 {dimension_numbers = #tpu.dot_dimension_numbers<[1], [0], [0], [1], [0, 0, 1, 1], [], []>} : vector<2x128xf32>, vector<128x128xf32>, vector<2x128xf32> -> vector<2x128xf32>
    %16 = arith.addf %13, %15 : vector<2x128xf32>
    %17 = math.tanh %16 : vector<2x128xf32>
    %cst_10 = arith.constant dense<0.000000e+00> : vector<2x128xf32>
    %18 = tpu.matmul %17, %4, %cst_10 {dimension_numbers = #tpu.dot_dimension_numbers<[1], [0], [0], [1], [0, 0, 1, 1], [], []>} : vector<2x128xf32>, vector<128x128xf32>, vector<2x128xf32> -> vector<2x128xf32>
    %19 = tpu.iota {dimensions = array<i32: 1>} : vector<2x128xi32>
    %c24_i32 = arith.constant 24 : i32
    %20 = vector.broadcast %c24_i32 : i32 to vector<2x128xi32>
    %21 = arith.cmpi slt, %19, %20 : vector<2x128xi32>
    %22 = arith.addf %12, %15 : vector<2x128xf32>
    %cst_11 = arith.constant 0.000000e+00 : f32
    %23 = vector.broadcast %cst_11 : f32 to vector<2x128xf32>
    %24 = arith.select %21, %22, %23 : vector<2x128xi1>, vector<2x128xf32>
    %25 = arith.addf %24, %18 : vector<2x128xf32>
    %26 = vector.broadcast %6 : vector<1x128xf32> to vector<2x128xf32>
    %27 = arith.addf %25, %26 : vector<2x128xf32>
    %c0_12 = arith.constant 0 : index
    %c0_13 = arith.constant 0 : index
    %28 = vector.load %arg2[%c0_12, %c0_13] : memref<2x128xf32, #tpu.memory_space<vmem>>, vector<2x128xf32>
    tpu.vector_store %arg2[%c0_12, %c0_13], %27 {strides = array<i32>} : memref<2x128xf32, #tpu.memory_space<vmem>>, vector<2x128xf32>,
    return
  }
}

</mosaic_0001>

<bundles_post_ra>
// kernel: tpu_custom_call.1
= control target key start
LH: loop header
LB: loop body
LE: loop exit
PB: predicated region body
PF: predicated region fallthrough
CT: control target
= control target key end

     0   :  { %7 = vsyncpa [#allocation3], 0  ;;  %s783_s0 = inlined_call_operand.hbm [shape: f32[2,32], index: 0, kind: input, shape index: {}]   ;;  %s784_s1 = inlined_call_operand.hbm [shape: f32[336,128], index: 1, kind: input, shape index: {}]   ;;  %s785_s2 = inlined_call_operand.hbm [shape: f32[2,128], index: 2, kind: output, shape index: {}]  }
   0x1   :  { %8 = vsyncpa [#allocation6], 0 }
   0x2   :  { %9 = vsyncpa [#allocation4], 0  ;;  %s691_s9 = smov [#allocation2]   ;;  %s692_s11 = smov [#allocation5]  }
   0x3   :  { %s16_s10 = sshll.u32 %s691_s9, 4  ;;  %s25_s12 = sshll.u32 %s692_s11, 4  ;;  %s17_s10 = int_to_ptr.vmem [resolvable:$true] %s16_s10  ;;  %s714_s12 = int_to_ptr.vmem [resolvable:$true] %s25_s12 }
   0x4   :  { %s619_s15 = scalar_lea.hbm %s783_s0, 32 }
   0x5   :  { %p620_p0 = scmp.ne.s32.totalorder %s783_s0, %s619_s15  ;;  %p623_p1 = scmp.lt.u32.totalorder %s619_s15, %s783_s0 }
   0x7   :  { %p625_p2 = pnand %p623_p1, %p620_p0 }
   0x9   :  { %628 = shalt.err (!%p625_p2)
}
   0xa   :  { %s629_s20 = scalar_lea.vmem %s17_s10, 32  ;;  %p634_p4 = scmp.lt.s32.totalorder %s17_s10, %s17_s10 }
   0xb   :  { %p630_p3 = scmp.ne.s32.totalorder %s17_s10, %s629_s20  ;;  %p635_p5 = scmp.lt.s32.totalorder %s629_s20, %s629_s20 }
   0xd   :  { %p636_p6 = por %p635_p5, %p634_p4 }
   0xf   :  { %p637_p7 = pnand %p636_p6, %p630_p3 }
  0x11   :  { %640 = shalt.err (!%p637_p7)
}
  0x12   :  { %19 = dma.hbm_to_vmem [thread:$0]  %s783_s0, 32, %s17_s10, [#allocation3]  }
  0x13   :  { %s641_s25 = scalar_lea.hbm %s784_s1, 5376 }
  0x14   :  { %p642_p8 = scmp.ne.s32.totalorder %s784_s1, %s641_s25  ;;  %p645_p9 = scmp.lt.u32.totalorder %s641_s25, %s784_s1 }
  0x16   :  { %p647_p10 = pnand %p645_p9, %p642_p8 }
  0x18   :  { %650 = shalt.err (!%p647_p10)
}
  0x19   :  { %s651_s30 = scalar_lea.vmem %s714_s12, 5376  ;;  %p656_p12 = scmp.lt.s32.totalorder %s714_s12, %s714_s12 }
  0x1a   :  { %p652_p11 = scmp.ne.s32.totalorder %s714_s12, %s651_s30  ;;  %p657_p13 = scmp.lt.s32.totalorder %s651_s30, %s651_s30 }
  0x1c   :  { %p658_p0 = por %p657_p13, %p656_p12 }
  0x1e   :  { %p659_p1 = pnand %p658_p0, %p652_p11 }
  0x20   :  { %662 = shalt.err (!%p659_p1)
}
  0x21   :  { %s693_s0 = smov 128   ;;  %s694_s3 = smov 8  }
  0x22   :  { %31 = dma.hbm_to_vmem [thread:$0]  %s784_s1, 5376, %s714_s12, [#allocation6], %s693_s0, %s693_s0, %s694_s3  }
  0x23   :  { %685 = dma.done.wait [#allocation3], 32  }
  0x24   :  { %686 = vsyncadd [#allocation3], 4294967264 }
  0x25   :  { %687 = dma.done.wait [#allocation6], 5376  }
  0x26   :  { %688 = vsyncadd [#allocation6], 4294961920  ;;  %v695_v0 = vmov 0.0|0.0   ;;  %vm696_vm0 = vmmov 0   ;;  %v697_v1 = vmov 0.0   ;;  %v39_v2 = vld [vmem:[#allocation5] sm:$0xff] }
  0x27   :  { %545 = vmatprep.subr.bf16.mxu0 %v695_v0  ;;  %461 = vmatprep.mubr.msk.f32.mxu0 %vm696_vm0, %v697_v1  ;;  %v40_v3 = vld [vmem:[#allocation5 + $0x8] sm:$0xff]  ;;  %v41_v4 = vld [vmem:[#allocation5 + $0x10] sm:$0xff]  ;;  %v42_v6 = vld [vmem:[#allocation5 + $0x18] sm:$0xff]  ;;  %vm85_vm1 = vcmask 261120   ;;  %s698_s1 = smov [#allocation7]  }
  0x28   :  { %551 = vmatprep.subr.bf16.mxu1 %v695_v0  ;;  %472 = vmatprep.mubr.msk.f32.mxu1 %vm696_vm0, %v697_v1  ;;  %v546_v5 = vpack.c.bf16 %v40_v3, %v39_v2  ;;  %v549_v7 = vpack.c.bf16 %v42_v6, %v41_v4  ;;  %v38_v8 = vld [vmem:[#allocation2] sm:$0x3]  ;;  %v43_v9 = vld [vmem:[#allocation5 + $0x20] sm:$0xff]  ;;  %v44_v10 = vld [vmem:[#allocation5 + $0x28] sm:$0xff]  ;;  %s395_s6 = sshll.u32 %s698_s1, 4  ;;  %s396_s6 = int_to_ptr.vmem [resolvable:$true] %s395_s6 }
  0x29   :  { %v45_v11 = vld [vmem:[#allocation5 + $0x30] sm:$0xff]  ;;  %v552_v12 = vpack.c.bf16 %v44_v10, %v43_v9  ;;  %v46_v13 = vld [vmem:[#allocation5 + $0x38] sm:$0xff]  ;;  %v47_v15 = vld [vmem:[#allocation5 + $0x40] sm:$0xff]  ;;  %s663_s7 = scalar_lea.vmem %s396_s6, 32  ;;  %p668_p3 = scmp.lt.s32.totalorder %s396_s6, %s396_s6 }
  0x2a   :  { %547 = vmatpush3.bf16.msra.mxu0 %v546_v5  ;;  %v555_v14 = vpack.c.bf16 %v46_v13, %v45_v11  ;;  %v48_v16 = vld [vmem:[#allocation5 + $0x48] sm:$0xff]  ;;  %v49_v17 = vld [vmem:[#allocation5 + $0x50] sm:$0xff]  ;;  %v50_v19 = vld [vmem:[#allocation5 + $0x58] sm:$0xff]  ;;  %p664_p2 = scmp.ne.s32.totalorder %s396_s6, %s663_s7  ;;  %p669_p4 = scmp.lt.s32.totalorder %s663_s7, %s663_s7 }
  0x2b   :  { %548 = vmatprep.subr.bf16.mxu0 %v695_v0  ;;  %553 = vmatpush3.bf16.msra.mxu1 %v552_v12  ;;  %v558_v18 = vpack.c.bf16 %v48_v16, %v47_v15  ;;  %v561_v20 = vpack.c.bf16 %v50_v19, %v49_v17  ;;  %v51_v21 = vld [vmem:[#allocation5 + $0x60] sm:$0xff]  ;;  %v52_v22 = vld [vmem:[#allocation5 + $0x68] sm:$0xff]  ;;  %v53_v24 = vld [vmem:[#allocation5 + $0x70] sm:$0xff] }
  0x2c   :  { %554 = vmatprep.subr.bf16.mxu1 %v695_v0  ;;  %v564_v23 = vpack.c.bf16 %v52_v22, %v51_v21  ;;  %v54_v25 = vld [vmem:[#allocation5 + $0x78] sm:$0xff]  ;;  %v55_v27 = vld [vmem:[#allocation5 + $0x80] sm:$0xff]  ;;  %v56_v28 = vld [vmem:[#allocation5 + $0x88] sm:$0xff]  ;;  %p670_p5 = por %p669_p4, %p668_p3 }
  0x2d   :  { %v567_v26 = vpack.c.bf16 %v54_v25, %v53_v24  ;;  %v570_v29 = vpack.c.bf16 %v56_v28, %v55_v27  ;;  %v405_v30 = vld [vmem:[#allocation5 + $0x140] ss:$0 sm:$0xff]  ;;  %v57_v35 = vld [vmem:[#allocation5 + $0x90] sm:$0xff]  ;;  %v58_v36 = vld [vmem:[#allocation5 + $0x98] sm:$0xff] }
  0x2e   :  { %550 = vmatpush3.bf16.msra.mxu0 %v549_v7  ;;  %v573_v37 = vpack.c.bf16 %v58_v36, %v57_v35  ;;  %v59_v38 = vld [vmem:[#allocation5 + $0xa0] sm:$0xff]  ;;  %v60_v39 = vld [vmem:[#allocation5 + $0xa8] sm:$0xff]  ;;  %v61_v41 = vld [vmem:[#allocation5 + $0xb0] sm:$0xff]  ;;  %p671_p6 = pnand %p670_p5, %p664_p2 }
  0x2f   :  { %557 = vmatprep.subr.bf16.mxu0 %v695_v0  ;;  %556 = vmatpush3.bf16.msra.mxu1 %v555_v14  ;;  %v576_v40 = vpack.c.bf16 %v60_v39, %v59_v38  ;;  %v62_v42 = vld [vmem:[#allocation5 + $0xb8] sm:$0xff]  ;;  %v63_v44 = vld [vmem:[#allocation5 + $0xc0] sm:$0xff]  ;;  %v64_v45 = vld [vmem:[#allocation5 + $0xc8] sm:$0xff]  ;;  %v377_v14 = vlaneseq }
  0x30   :  { %581 = vmatprep.subr.bf16.mxu1 %v695_v0  ;;  %v579_v43 = vpack.c.bf16 %v62_v42, %v61_v41  ;;  %v65_v46 = vld [vmem:[#allocation5 + $0xd0] sm:$0xff]  ;;  %v582_v47 = vpack.c.bf16 %v64_v45, %v63_v44  ;;  %v66_v48 = vld [vmem:[#allocation5 + $0xd8] sm:$0xff]  ;;  %v67_v50 = vld [vmem:[#allocation5 + $0xe0] sm:$0xff] }
  0x31   :  { %462 = vmatmul.mubr.msk.f32.vlgmr.msra.gmra.mrb[0].mxu0 %vm85_vm1, %v38_v8  ;;  %v585_v49 = vpack.c.bf16 %v66_v48, %v65_v46  ;;  %v68_v51 = vld [vmem:[#allocation5 + $0xe8] sm:$0xff]  ;;  %v69_v53 = vld [vmem:[#allocation5 + $0xf0] sm:$0xff]  ;;  %v70_v54 = vld [vmem:[#allocation5 + $0xf8] sm:$0xff]  ;;  %v378_v15 = vand.u32 127, %v377_v14 }
  0x32   :  { %507 = vmatprep.mubr.msk.f32.mxu0 %vm696_vm0, %v697_v1  ;;  %559 = vmatpush3.bf16.msra.mxu0 %v558_v18  ;;  %v588_v52 = vpack.c.bf16 %v68_v51, %v67_v50  ;;  %v591_v55 = vpack.c.bf16 %v70_v54, %v69_v53  ;;  %v71_v56 = vld [vmem:[#allocation5 + $0x100] sm:$0xff]  ;;  %v72_v57 = vld [vmem:[#allocation5 + $0x108] sm:$0xff]  ;;  %v73_v63 = vld [vmem:[#allocation5 + $0x110] sm:$0xff] }
  0x33   :  { %560 = vmatprep.subr.bf16.mxu0 %v695_v0  ;;  %v594_v58 = vpack.c.bf16 %v72_v57, %v71_v56  ;;  %v75_v3 = vld [vmem:[#allocation5 + $0x120] sm:$0xff]  ;;  %v76_v4 = vld [vmem:[#allocation5 + $0x128] sm:$0xff]  ;;  %v77_v6 = vld [vmem:[#allocation5 + $0x130] sm:$0xff]  ;;  %vm379_vm2 = vcmp.lt.s32.totalorder %v378_v15, 24 }
  0x34   :  { %v600_v5 = vpack.c.bf16 %v76_v4, %v75_v3  ;;  %v78_v7 = vld [vmem:[#allocation5 + $0x138] sm:$0xff]  ;;  %v408_v16 = vld [vmem:[#allocation5 + $0x148] ss:$0 sm:$0xff] }
  0x35   :  { %v603_v8 = vpack.c.bf16 %v78_v7, %v77_v6 }
  0x36   :  { %562 = vmatpush3.bf16.msra.mxu0 %v561_v20 }
  0x37   :  { %563 = vmatprep.subr.bf16.mxu0 %v695_v0 }
  0x3a   :  { %565 = vmatpush3.bf16.msra.mxu0 %v564_v23 }
  0x3b   :  { %566 = vmatprep.subr.bf16.mxu0 %v695_v0 }
  0x3e   :  { %568 = vmatpush3.bf16.msra.mxu0 %v567_v26 }
  0x3f   :  { %569 = vmatprep.subr.bf16.mxu0 %v695_v0 }
  0x42   :  { %571 = vmatpush3.bf16.msra.mxu0 %v570_v29 }
  0x43   :  { %572 = vmatprep.subr.bf16.mxu0 %v695_v0 }
  0x46   :  { %574 = vmatpush3.bf16.msra.mxu0 %v573_v37 }
  0x47   :  { %575 = vmatprep.subr.bf16.mxu0 %v695_v0 }
  0x4a   :  { %577 = vmatpush3.bf16.msra.mxu0 %v576_v40 }
  0x4b   :  { %578 = vmatprep.subr.bf16.mxu0 %v695_v0 }
  0x4e   :  { %580 = vmatpush3.bf16.msra.mxu0 %v579_v43 }
 0x104   :  { %v155_v31 = vpop.f32.mrb[0].mxu0 }
 0x105   :  { %v156_v32 = vadd.f32 %v405_v30, %v155_v31  ;;  %v463_v33 = vpop.f32.mrb[1].mxu0 }
 0x107   :  { %613 = vtanh.f32 %v156_v32 }
 0x111   :  { %v614_v34 = vpop.eup %613 }
 0x112   :  { %473 = vmatmul.mubr.msk.f32.vlgmr.msra.gmra.mrb[0].mxu1 %vm85_vm1, %v614_v34 }
 0x113   :  { %542 = vmatprep.mubr.msk.f32.mxu1 %vm696_vm0, %v697_v1  ;;  %583 = vmatpush3.bf16.msra.mxu1 %v582_v47  ;;  %v74_v1 = vld [vmem:[#allocation5 + $0x118] sm:$0xff] }
 0x114   :  { %584 = vmatprep.subr.bf16.mxu1 %v695_v0  ;;  %v597_v2 = vpack.c.bf16 %v74_v1, %v73_v63 }
 0x117   :  { %586 = vmatpush3.bf16.msra.mxu1 %v585_v49 }
 0x118   :  { %587 = vmatprep.subr.bf16.mxu1 %v695_v0 }
 0x11b   :  { %589 = vmatpush3.bf16.msra.mxu1 %v588_v52 }
 0x11c   :  { %590 = vmatprep.subr.bf16.mxu1 %v695_v0 }
 0x11f   :  { %592 = vmatpush3.bf16.msra.mxu1 %v591_v55 }
 0x120   :  { %593 = vmatprep.subr.bf16.mxu1 %v695_v0 }
 0x123   :  { %595 = vmatpush3.bf16.msra.mxu1 %v594_v58 }
 0x124   :  { %596 = vmatprep.subr.bf16.mxu1 %v695_v0 }
 0x127   :  { %598 = vmatpush3.bf16.msra.mxu1 %v597_v2 }
 0x128   :  { %599 = vmatprep.subr.bf16.mxu1 %v695_v0 }
 0x12b   :  { %601 = vmatpush3.bf16.msra.mxu1 %v600_v5 }
 0x12c   :  { %602 = vmatprep.subr.bf16.mxu1 %v695_v0 }
 0x12f   :  { %604 = vmatpush3.bf16.msra.mxu1 %v603_v8 }
 0x1e5   :  { %v229_v59 = vpop.f32.mrb[0].mxu1 }
 0x1e6   :  { %v233_v60 = vadd.f32 %v229_v59, %v156_v32  ;;  %v474_v61 = vpop.f32.mrb[1].mxu1 }
 0x1e8   :  { %615 = vtanh.f32 %v233_v60 }
 0x1f2   :  { %v616_v62 = vpop.eup %615 }
 0x1f3   :  { %508 = vmatmul.mubr.f32.vlgmr.msra.gmra.mrb[2].mxu0 %v616_v62 }
 0x2c6   :  { %v301_v9 = vpop.f32.mrb[2].mxu0 }
 0x2c7   :  { %v305_v10 = vadd.f32 %v301_v9, %v233_v60  ;;  %v380_v11 = vadd.f32 %v301_v9, %v229_v59  ;;  %v509_v12 = vpop.f32.mrb[3].mxu0 }
 0x2c9   :  { %617 = vtanh.f32 %v305_v10  ;;  %v381_v18 = vsel %vm379_vm2, %v380_v11, 0.0 }
 0x2d3   :  { %v618_v13 = vpop.eup %617 }
 0x2d4   :  { %543 = vmatmul.mubr.f32.vlgmr.msra.gmra.mrb[2].mxu1 %v618_v13 }
 0x3a7   :  { %v373_v17 = vpop.f32.mrb[2].mxu1 }
 0x3a8   :  { %v382_v19 = vadd.f32 %v381_v18, %v373_v17  ;;  %v544_v20 = vpop.f32.mrb[3].mxu1 }
 0x3aa   :  { %v387_v21 = vadd.f32 %v408_v16, %v382_v19 }
 0x3ac   :  { %388 = vst [vmem:[#allocation7] sm:$0x3] %v387_v21 }
 0x3ad   :  { %674 = shalt.err (!%p671_p6)
}
 0x3ae   :  { %s675_s10 = scalar_lea.hbm %s785_s2, 32 }
 0x3af   :  { %p676_p7 = scmp.ne.s32.totalorder %s785_s2, %s675_s10  ;;  %p679_p8 = scmp.lt.u32.totalorder %s675_s10, %s785_s2 }
 0x3b1   :  { %p681_p9 = pnand %p679_p8, %p676_p7 }
 0x3b3   :  { %684 = shalt.err (!%p681_p9)
}
 0x3b4   :  { %398 = dma.vmem_to_hbm [thread:$0]  %s396_s6, 32, %s785_s2, [#allocation4]  }
 0x3b5   :  { %689 = dma.done.wait [#allocation4], 32  }
 0x3b6   :  { %690 = vsyncadd [#allocation4], 4294967264 }
 0x3b7   :  { %402 = vsyncpa [#allocation3], 1 }
 0x3b8   :  { %403 = vsyncpa [#allocation6], 1 }
 0x3b9   :  { %404 = vsyncpa [#allocation4], 1 }

</bundles_post_ra>
